<compile_context>
chip_gen: v5e
topology: v5e:2x2
jax: 0.10.0
libtpu: 0.0.40
codegen_flags: <defaults>
</compile_context>

<pallas_src>
import math

import jax
import jax.numpy as jnp
from jax.experimental import pallas as pl
from jax.experimental.pallas import tpu as pltpu


def _round_up(x: int, m: int) -> int:
    return (x + m - 1) // m * m


def make_sinusoidal_pos_emb(num_steps: int, dim: int, rescale_steps: int = 3142,
                            out_dtype=jnp.float32, tile_rows=None):
    """Returns apply(x): timesteps of any shape -> embedding of shape x.shape + (dim,)."""
    assert dim % 2 == 0, "dim must be even (output is [sin | cos])"
    assert dim >= 4, "dim must be >= 4 (module divides by half_dim - 1)"

    half_dim = dim // 2
    num_steps_f = float(num_steps)
    rescale_f = float(rescale_steps)

    # --- lane packing / padding -------------------------------------------------
    if dim < 128 and 128 % dim == 0:
        pack = 128 // dim          # several timesteps per 128-lane output row
        width = 128
    else:
        pack = 1
        width = _round_up(dim, 128)  # pad lanes up to a multiple of 128 (stripped later)

    # --- host-precomputed tables (no exp in the kernel) --------------------------
    # Frequencies use the exact same expression as the reference.
    emb_coeff = math.log(100.0) / (half_dim - 1)
    freqs = jnp.exp(jnp.arange(half_dim, dtype=jnp.float32) * -emb_coeff)   # (half_dim,)
    row = jnp.concatenate([freqs, freqs])                                   # (dim,)  sin|cos halves
    phase_row = jnp.concatenate(
        [jnp.zeros((half_dim,), jnp.float32),
         jnp.full((half_dim,), math.pi / 2, dtype=jnp.float32)])            # (dim,)

    if pack == 1:
        tab = jnp.zeros((1, width), jnp.float32).at[0, :dim].set(row)       # (1, width)
        phase = jnp.zeros((1, width), jnp.float32).at[0, :dim].set(phase_row)
    else:
        # tab[p, c] = row[c - p*dim] if column c belongs to packed slot p, else 0.
        tab = jnp.zeros((pack, width), jnp.float32)
        for p in range(pack):
            tab = tab.at[p, p * dim:(p + 1) * dim].set(row)
        phase = jnp.tile(phase_row, pack).reshape(1, width)                 # (1, width)

    # --- tile size: ~4 MiB output block, rows a multiple of 8 --------------------
    if tile_rows is None:
        bytes_per_row = width * jnp.dtype(out_dtype).itemsize
        tile_rows = max(8, min(32768, (4 << 20) // bytes_per_row) // 8 * 8)
    assert tile_rows % 8 == 0

    # --- kernel -------------------------------------------------------------------
    def kernel(x_ref, tab_ref, phase_ref, o_ref):
        # x_ref: (T, pack) f32, tab_ref: (pack, width) f32, phase_ref: (1, width) f32,
        # o_ref: (T, width) out_dtype
        xs = x_ref[...] / num_steps_f * rescale_f          # same op order as reference
        # ang[t, p*dim + j] = xs[t, p] * row[j]  (off-slot terms are exact *0 + 0),
        # kept on the VPU as unrolled broadcast-mul-add (hidden under EUP/DMA).
        ang = xs[:, 0:1] * tab_ref[0:1, :]
        for p in range(1, pack):
            ang = ang + xs[:, p:p + 1] * tab_ref[p:p + 1, :]
        # Single full-width transcendental + one unmasked full-width store.
        o_ref[...] = jnp.sin(ang + phase_ref[...]).astype(o_ref.dtype)

    # --- wrapper -------------------------------------------------------------------
    @jax.jit
    def apply(x):
        orig_shape = x.shape
        xf = jnp.asarray(x, jnp.float32).reshape(-1)
        n = xf.shape[0]

        rows = pl.cdiv(max(n, 1), pack)
        rows8 = _round_up(rows, 8)
        # Aim for >= 4 grid steps when there is enough work: keeps v7x's two
        # TensorCores busy and keeps output writeback double-buffered.
        n_steps = max(1, pl.cdiv(rows8, tile_rows))
        if rows8 >= 4 * 8:
            n_steps = max(n_steps, 4)
        trows = _round_up(pl.cdiv(rows8, n_steps), 8)
        padded_rows = n_steps * trows

        xf = jnp.pad(xf, (0, padded_rows * pack - n))
        x2d = xf.reshape(padded_rows, pack)

        out = pl.pallas_call(
            kernel,
            out_shape=jax.ShapeDtypeStruct((padded_rows, width), out_dtype),
            grid=(n_steps,),
            in_specs=[
                pl.BlockSpec((trows, pack), lambda i: (i, 0)),
                pl.BlockSpec(tab.shape, lambda i: (0, 0)),    # tiny constant tables
                pl.BlockSpec(phase.shape, lambda i: (0, 0)),
            ],
            out_specs=pl.BlockSpec((trows, width), lambda i: (i, 0)),
            compiler_params=pltpu.CompilerParams(
                dimension_semantics=("parallel",),            # 2 TCs on v7x; harmless elsewhere
                vmem_limit_bytes=32 << 20),                   # headroom vs v5e's 16 MiB default
        )(x2d, tab, phase)

        if pack > 1:
            emb = out.reshape(padded_rows * pack, dim)        # free row-major reshape
        else:
            emb = out[:, :dim]                                # strip lane padding (if any)
        return emb[:n].reshape(*orig_shape, dim)

    return apply


def reference_sinusoidal_pos_emb(x, num_steps, dim, rescale_steps=3142):
    x = x / float(num_steps) * float(rescale_steps)
    half_dim = dim // 2
    emb = math.log(100.0) / (half_dim - 1)
    emb = jnp.exp(jnp.arange(half_dim, dtype=jnp.float32) * -emb)
    emb = x[..., None] * emb[None, ...]
    return jnp.concatenate([jnp.sin(emb), jnp.cos(emb)], axis=-1)


if __name__ == "__main__":
    num_steps = 1000
    dim = 32
    seq = 8

    key = jax.random.PRNGKey(0)
    x = jax.random.uniform(key, (seq,), dtype=jnp.float32,
                           minval=0.0, maxval=float(num_steps))

    emb_fn = make_sinusoidal_pos_emb(num_steps, dim)
    out = jax.block_until_ready(emb_fn(x))

    ref = reference_sinusoidal_pos_emb(x, num_steps, dim)
    assert out.shape == (seq, dim), out.shape
    err = float(jnp.max(jnp.abs(out.astype(jnp.float32) - ref)))
    # Angles reach ~rescale_steps (~3.1e3 rad); tolerance covers sin/cos impl
    # differences at that magnitude plus the ~1e-4 from the cos = sin(+pi/2) trick.
    assert err < 2e-3, f"mismatch vs reference: max|diff| = {err}"
    print("KERNEL_OK")
</pallas_src>

<mosaic_0001>
module attributes {stable_mosaic.version = 11 : i64} {
  func.func @kernel(%arg0: i32, %arg1: memref<8x4xf32, #tpu.memory_space<vmem>>, %arg2: memref<4x128xf32, #tpu.memory_space<vmem>>, %arg3: memref<1x128xf32, #tpu.memory_space<vmem>>, %arg4: memref<8x128xf32, #tpu.memory_space<vmem>>) attributes {dimension_semantics = [#tpu.dimension_semantics<parallel>], iteration_bounds = array<i64: 1>, scalar_prefetch = 0 : i64, scratch_operands = 0 : i64, tpu.core_type = #tpu.core_type<tc>, window_params = [{transform_indices = @transform_0, window_bounds = array<i64: 8, 4>}, {pipeline_mode = #tpu.pipeline_mode<synchronous>, transform_indices = @transform_1, window_bounds = array<i64: 4, 128>}, {pipeline_mode = #tpu.pipeline_mode<synchronous>, transform_indices = @transform_2, window_bounds = array<i64: 1, 128>}, {transform_indices = @transform_3, window_bounds = array<i64: 8, 128>}]} {
    %c0 = arith.constant 0 : index
    %c0_0 = arith.constant 0 : index
    %0 = vector.load %arg1[%c0, %c0_0] : memref<8x4xf32, #tpu.memory_space<vmem>>, vector<8x4xf32>
    %cst = arith.constant 1.000000e+03 : f32
    %1 = vector.broadcast %cst : f32 to vector<8x4xf32>
    %2 = arith.divf %0, %1 : vector<8x4xf32>
    %cst_1 = arith.constant 3.142000e+03 : f32
    %3 = vector.broadcast %cst_1 : f32 to vector<8x4xf32>
    %4 = arith.mulf %2, %3 : vector<8x4xf32>
    %5 = vector.extract_strided_slice %4 {offsets = [0, 0], sizes = [8, 1], strides = [1, 1]} : vector<8x4xf32> to vector<8x1xf32>
    %c0_2 = arith.constant 0 : index
    %c0_3 = arith.constant 0 : index
    %6 = vector.load %arg2[%c0_2, %c0_3] : memref<4x128xf32, #tpu.memory_space<vmem>>, vector<1x128xf32>
    %7 = vector.broadcast %5 : vector<8x1xf32> to vector<8x128xf32>
    %8 = vector.broadcast %6 : vector<1x128xf32> to vector<8x128xf32>
    %9 = arith.mulf %7, %8 : vector<8x128xf32>
    %10 = vector.extract_strided_slice %4 {offsets = [0, 1], sizes = [8, 1], strides = [1, 1]} : vector<8x4xf32> to vector<8x1xf32>
    %c1 = arith.constant 1 : index
    %c0_4 = arith.constant 0 : index
    %11 = vector.load %arg2[%c1, %c0_4] : memref<4x128xf32, #tpu.memory_space<vmem>>, vector<1x128xf32>
    %12 = vector.broadcast %10 : vector<8x1xf32> to vector<8x128xf32>
    %13 = vector.broadcast %11 : vector<1x128xf32> to vector<8x128xf32>
    %14 = arith.mulf %12, %13 : vector<8x128xf32>
    %15 = arith.addf %9, %14 : vector<8x128xf32>
    %16 = vector.extract_strided_slice %4 {offsets = [0, 2], sizes = [8, 1], strides = [1, 1]} : vector<8x4xf32> to vector<8x1xf32>
    %c2 = arith.constant 2 : index
    %c0_5 = arith.constant 0 : index
    %17 = vector.load %arg2[%c2, %c0_5] : memref<4x128xf32, #tpu.memory_space<vmem>>, vector<1x128xf32>
    %18 = vector.broadcast %16 : vector<8x1xf32> to vector<8x128xf32>
    %19 = vector.broadcast %17 : vector<1x128xf32> to vector<8x128xf32>
    %20 = arith.mulf %18, %19 : vector<8x128xf32>
    %21 = arith.addf %15, %20 : vector<8x128xf32>
    %22 = vector.extract_strided_slice %4 {offsets = [0, 3], sizes = [8, 1], strides = [1, 1]} : vector<8x4xf32> to vector<8x1xf32>
    %c3 = arith.constant 3 : index
    %c0_6 = arith.constant 0 : index
    %23 = vector.load %arg2[%c3, %c0_6] : memref<4x128xf32, #tpu.memory_space<vmem>>, vector<1x128xf32>
    %24 = vector.broadcast %22 : vector<8x1xf32> to vector<8x128xf32>
    %25 = vector.broadcast %23 : vector<1x128xf32> to vector<8x128xf32>
    %26 = arith.mulf %24, %25 : vector<8x128xf32>
    %27 = arith.addf %21, %26 : vector<8x128xf32>
    %c0_7 = arith.constant 0 : index
    %c0_8 = arith.constant 0 : index
    %28 = vector.load %arg3[%c0_7, %c0_8] : memref<1x128xf32, #tpu.memory_space<vmem>>, vector<1x128xf32>
    %29 = vector.broadcast %28 : vector<1x128xf32> to vector<8x128xf32>
    %30 = arith.addf %27, %29 : vector<8x128xf32>
    %31 = math.sin %30 : vector<8x128xf32>
    %c0_9 = arith.constant 0 : index
    %c0_10 = arith.constant 0 : index
    %32 = vector.load %arg4[%c0_9, %c0_10] : memref<8x128xf32, #tpu.memory_space<vmem>>, vector<8x128xf32>
    tpu.vector_store %arg4[%c0_9, %c0_10], %31 {strides = array<i32>} : memref<8x128xf32, #tpu.memory_space<vmem>>, vector<8x128xf32>,
    return
  }
  func.func @transform_0(%arg0: i32) -> (i32, i32) {
    %c0_i32 = arith.constant 0 : i32
    %c0_i32_0 = arith.constant 0 : i32
    return %arg0, %c0_i32 : i32, i32
  }
  func.func @transform_1(%arg0: i32) -> (i32, i32) {
    %c0_i32 = arith.constant 0 : i32
    %c0_i32_0 = arith.constant 0 : i32
    %c0_i32_1 = arith.constant 0 : i32
    return %c0_i32, %c0_i32_0 : i32, i32
  }
  func.func @transform_2(%arg0: i32) -> (i32, i32) {
    %c0_i32 = arith.constant 0 : i32
    %c0_i32_0 = arith.constant 0 : i32
    %c0_i32_1 = arith.constant 0 : i32
    return %c0_i32, %c0_i32_0 : i32, i32
  }
  func.func @transform_3(%arg0: i32) -> (i32, i32) {
    %c0_i32 = arith.constant 0 : i32
    %c0_i32_0 = arith.constant 0 : i32
    return %arg0, %c0_i32 : i32, i32
  }
}

</mosaic_0001>

<bundles_post_ra>
// kernel: apply.1
= control target key start
LH: loop header
LB: loop body
LE: loop exit
PB: predicated region body
PF: predicated region fallthrough
CT: control target
= control target key end

     0   :  { %v247_v0 = vmov 0   ;;  %v248_v1 = vmov 1000.0   ;;  %v249_v2 = vmov 2   ;;  %v250_v12 = vmov 1   ;;  %s360_s1 = inlined_call_operand.vmem [shape: f32[4,128], index: 1, kind: input, shape index: {}]   ;;  %s361_s0 = inlined_call_operand.vmem [shape: f32[8,4], index: 0, kind: input, shape index: {}]   ;;  %s362_s2 = inlined_call_operand.vmem [shape: f32[1,128], index: 2, kind: input, shape index: {}]   ;;  %s363_s3 = inlined_call_operand.vmem [shape: f32[8,128], index: 3, kind: output, shape index: {}]  }
   0x1   :  { %235 = vset.pattern.permute.xlu0 %v247_v0  ;;  %245 = vrcp.f32 %v248_v1  ;;  %237 = vset.pattern.permute.xlu1 %v249_v2  ;;  %v14_v7 = vld [vmem:[%s361_s0] sm:$0xff]  ;;  %v251_v13 = vmov 3   ;;  %v252_v42 = vmov 683565275   ;;  %v253_v44 = vmov 2475754826  }
   0x2   :  { %v240_v16 = vld [vmem:[%s360_s1] ss:$0 sm:$0xff]  ;;  %v242_v17 = vld [vmem:[%s360_s1 + $0x1] ss:$0 sm:$0xff]  ;;  %v241_v18 = vld [vmem:[%s360_s1 + $0x2] ss:$0 sm:$0xff] }
   0x3   :  { %v243_v19 = vld [vmem:[%s360_s1 + $0x3] ss:$0 sm:$0xff]  ;;  %v244_v27 = vld [vmem:[%s362_s2] ss:$0 sm:$0xff]  ;;  %v254_v47 = vmov 2131351028  }
   0x4   :  { %v255_v50 = vmov 2102212464   ;;  %v256_v53 = vmov 920167782   ;;  %v257_v56 = vmov 1326507024  }
   0x7   :  { %v246_v3 = vpop.eup %245 }
   0x8   :  { %v16_v4 = vmul.f32 1000.0, %v246_v3  ;;  %vm20_vm0 = vweird.f32 %v246_v3 }
   0xa   :  { %v17_v5 = vsub.f32 1.0, %v16_v4 }
   0xc   :  { %v18_v6 = vmul.f32 %v246_v3, %v17_v5 }
   0xe   :  { %v19_v8 = vadd.f32 %v246_v3, %v18_v6 }
  0x10   :  { %v21_v9 = vsel %vm20_vm0, %v246_v3, %v19_v8 }
  0x11   :  { %v22_v10 = vmul.f32 %v21_v9, %v14_v7 }
  0x13   :  { %v23_v11 = vmul.f32 3142.0, %v22_v10 }
  0x15   :  { %27 = vperm.xlu0 %235, %v23_v11   ;;  %42 = vperm.xlu1 %237, %v23_v11  }
  0x1d   :  { %236 = vset.pattern.permute.xlu0 %v250_v12  ;;  %238 = vset.pattern.permute.xlu1 %v251_v13 }
  0x1e   :  { %34 = vperm.xlu0 %236, %v23_v11   ;;  %50 = vperm.xlu1 %238, %v23_v11  }
  0x26   :  { %239 = vset.pattern.permute.xlu0 %v251_v13 }
  0x87   :  { %v28_v14 = vpop.permute.xlu0 %27  ;;  %v43_v15 = vpop.permute.xlu1 %42 }
  0x88   :  { %v31_v22 = vmul.f32 %v240_v16, %v28_v14  ;;  %v46_v24 = vmul.f32 %v241_v18, %v43_v15 }
  0x90   :  { %v35_v20 = vpop.permute.xlu0 %34  ;;  %v51_v21 = vpop.permute.xlu1 %50 }
  0x91   :  { %v38_v23 = vmul.f32 %v242_v17, %v35_v20  ;;  %v54_v26 = vmul.f32 %v243_v19, %v51_v21 }
  0x93   :  { %v39_v25 = vadd.f32 %v38_v23, %v31_v22 }
  0x95   :  { %v47_v28 = vadd.f32 %v46_v24, %v39_v25 }
  0x97   :  { %v55_v29 = vadd.f32 %v54_v26, %v47_v28 }
  0x99   :  { %v297_v30 = vadd.f32 %v244_v27, %v55_v29 }
  0x9b   :  { %v64_v31 = vand.u32 2139095040, %v297_v30  ;;  %v61_v34 = vand.u32 2147483647, %v297_v30  ;;  %vm63_vm13 = vcmp.lt.s32.totalorder %v297_v30, 0 }
  0x9d   :  { %v65_v32 = vshrl.u32 %v64_v31, 23  ;;  %v68_v36 = vand.u32 8388607, %v61_v34  ;;  %vm62_vm14 = vcmp.le.f32.partialorder %v61_v34, 0.7853982 }
  0x9f   :  { %v221_v33 = vadd.s32 4294967169, %v65_v32  ;;  %v69_v40 = vor.u32 8388608, %v68_v36 }
  0xa1   :  { %v71_v35 = vadd.s32 1, %v221_v33  ;;  %v314_v63 = vshll.u32 %v69_v40, 8 }
  0xa3   :  { %vm72_vm1 = vcmp.gt.s32.totalorder %v71_v35, 0  ;;  %v110_v9 = vand.u32 65535, %v314_v63  ;;  %v111_v10 = vshrl.u32 %v314_v63, 16 }
  0xa4   :  { %v73_v37 = vsel %vm72_vm1, %v71_v35, 0 }
  0xa5   :  { %v75_v38 = vand.u32 31, %v73_v37  ;;  %v305_v41 = vshrl.u32 %v73_v37, 5 }
  0xa7   :  { %v303_v39 = vsub.s32 32, %v75_v38  ;;  %v78_v43 = vshll.u32 %v252_v42, %v75_v38  ;;  %v81_v45 = vshll.u32 %v253_v44, %v75_v38  ;;  %v84_v49 = vshll.u32 %v254_v47, %v75_v38 }
  0xa8   :  { %v87_v52 = vshll.u32 %v255_v50, %v75_v38  ;;  %v90_v55 = vshll.u32 %v256_v53, %v75_v38  ;;  %vm93_vm2 = vcmp.lt.s32.totalorder %v305_v41, 1  ;;  %vm96_vm3 = vcmp.lt.s32.totalorder %v305_v41, 4 }
  0xa9   :  { %v79_v46 = vshrl.u32 %v253_v44, %v303_v39  ;;  %v82_v48 = vshrl.u32 %v254_v47, %v303_v39  ;;  %v85_v51 = vshrl.u32 %v255_v50, %v303_v39  ;;  %v88_v54 = vshrl.u32 %v256_v53, %v303_v39 }
  0xaa   :  { %v91_v57 = vshrl.u32 %v257_v56, %v303_v39  ;;  %vm95_vm4 = vcmp.lt.s32.totalorder %v305_v41, 3  ;;  %vm94_vm5 = vcmp.lt.s32.totalorder %v305_v41, 2  ;;  %v77_v37 = vshrl.u32 %v252_v42, %v303_v39 }
  0xab   :  { %v80_v58 = vor.u32 %v79_v46, %v78_v43  ;;  %v83_v59 = vor.u32 %v82_v48, %v81_v45  ;;  %v86_v60 = vor.u32 %v85_v51, %v84_v49  ;;  %v89_v61 = vor.u32 %v88_v54, %v87_v52 }
  0xac   :  { %v92_v62 = vor.u32 %v91_v57, %v90_v55 }
  0xad   :  { %v101_v1 = vsel %vm93_vm2, %v80_v58, %v83_v59  ;;  %v105_v2 = vsel %vm93_vm2, %v83_v59, %v86_v60  ;;  %v102_v3 = vsel %vm96_vm3, %v89_v61, 920167782  ;;  %v98_v33 = vsel %vm96_vm3, %v86_v60, 2102212464 }
  0xae   :  { %v106_v4 = vsel %vm96_vm3, %v92_v62, 1326507024  ;;  %v103_v5 = vsel %vm95_vm4, %v86_v60, %v102_v3  ;;  %v97_v46 = vsel %vm93_vm2, %v77_v37, %v80_v58  ;;  %v99_v47 = vsel %vm95_vm4, %v83_v59, %v98_v33 }
  0xaf   :  { %v107_v6 = vsel %vm95_vm4, %v89_v61, %v106_v4  ;;  %v104_v7 = vsel %vm94_vm5, %v101_v1, %v103_v5  ;;  %v100_v39 = vsel %vm94_vm5, %v97_v46, %v99_v47  ;;  %vm204_vm2 = vweird.f32 %v297_v30 }
  0xb0   :  { %v108_v8 = vsel %vm94_vm5, %v105_v2, %v107_v6  ;;  %v134_v13 = vand.u32 65535, %v104_v7  ;;  %v135_v14 = vshrl.u32 %v104_v7, 16  ;;  %v154_v54 = vmul.u32 %v314_v63, %v100_v39 }
  0xb1   :  { %v112_v11 = vand.u32 65535, %v108_v8  ;;  %v113_v12 = vshrl.u32 %v108_v8, 16 }
  0xb2   :  { %v137_v17 = vmul.u32 %v135_v14, %v110_v9  ;;  %v138_v18 = vmul.u32 %v134_v13, %v111_v10  ;;  %v136_v22 = vmul.u32 %v134_v13, %v110_v9  ;;  %v139_v26 = vmul.u32 %v135_v14, %v111_v10 }
  0xb3   :  { %v115_v15 = vmul.u32 %v113_v12, %v110_v9  ;;  %v116_v16 = vmul.u32 %v112_v11, %v111_v10  ;;  %v114_v19 = vmul.u32 %v112_v11, %v110_v9  ;;  %v117_v21 = vmul.u32 %v113_v12, %v111_v10 }
  0xb4   :  { %v140_v23 = vshll.u32 %v137_v17, 16  ;;  %v142_v28 = vshll.u32 %v138_v18, 16  ;;  %v141_v44 = vshrl.u32 %v137_v17, 16  ;;  %v143_v50 = vshrl.u32 %v138_v18, 16 }
  0xb5   :  { %v118_v20 = vshll.u32 %v115_v15, 16  ;;  %v120_v24 = vshll.u32 %v116_v16, 16  ;;  %v119_v38 = vshrl.u32 %v115_v15, 16  ;;  %v121_v48 = vshrl.u32 %v116_v16, 16 }
  0xb6   :  { %vm144_vm7 = vc.u32 %v136_v22, %v140_v23  ;;  %v146_v29 = vadd.s32 %v140_v23, %v136_v22 }
  0xb7   :  { %vm122_vm6 = vc.u32 %v114_v19, %v118_v20  ;;  %v124_v25 = vadd.s32 %v118_v20, %v114_v19  ;;  %v145_v32 = vsel %vm144_vm7, 1, %v247_v0 }
  0xb8   :  { %v123_v27 = vsel %vm122_vm6, 1, %v247_v0  ;;  %v147_v36 = vadd.s32 %v145_v32, %v139_v26  ;;  %vm148_vm9 = vc.u32 %v146_v29, %v142_v28  ;;  %v150_v53 = vadd.s32 %v146_v29, %v142_v28 }
  0xb9   :  { %v125_v31 = vadd.s32 %v123_v27, %v117_v21  ;;  %vm126_vm8 = vc.u32 %v124_v25, %v120_v24  ;;  %v149_v43 = vsel %vm148_vm9, 1, %v247_v0 }
  0xba   :  { %v127_v35 = vsel %vm126_vm8, 1, %v247_v0  ;;  %v151_v45 = vadd.s32 %v149_v43, %v147_v36 }
  0xbb   :  { %v129_v40 = vadd.s32 %v127_v35, %v125_v31 }
  0xbc   :  { %v152_v51 = vadd.s32 %v151_v45, %v141_v44 }
  0xbd   :  { %v130_v49 = vadd.s32 %v129_v40, %v119_v38 }
  0xbe   :  { %v153_v42 = vadd.s32 %v152_v51, %v143_v50 }
  0xbf   :  { %v131_v52 = vadd.s32 %v130_v49, %v121_v48 }
  0xc0   :  { %v157_v0 = vadd.s32 1, %v153_v42 }
  0xc1   :  { %vm156_vm10 = vc.u32 %v131_v52, %v150_v53  ;;  %v155_v41 = vadd.s32 %v150_v53, %v131_v52 }
  0xc2   :  { %v158_v55 = vsel %vm156_vm10, %v157_v0, %v153_v42 }
  0xc3   :  { %v159_v56 = vadd.s32 %v158_v55, %v154_v54 }
  0xc5   :  { %v160_v57 = vadd.s32 536870912, %v159_v56 }
  0xc7   :  { %v161_v58 = vshrl.u32 %v160_v57, 30 }
  0xc9   :  { %v162_v60 = vshll.u32 %v161_v58, 30  ;;  %v185_v16 = vsub.s32 4, %v161_v58 }
  0xcb   :  { %v163_v59 = vsub.s32 %v159_v56, %v162_v60  ;;  %v186_v21 = vsel %vm63_vm13, %v185_v16, %v161_v58 }
  0xcc   :  { %v188_v24 = vsel %vm62_vm14, 0, %v186_v21 }
  0xcd   :  { %vm164_vm11 = vcmp.lt.s32.totalorder %v163_v59, 0  ;;  %v165_v61 = vsub.s32 0, %v163_v59  ;;  %v205_v29 = vadd.s32 3, %v188_v24 }
  0xcf   :  { %v166_v62 = vsel %vm164_vm11, %v165_v61, %v163_v59  ;;  %v206_v35 = vand.u32 3, %v205_v29 }
  0xd0   :  { %v167_v1 = vclz %v166_v62 }
  0xd1   :  { %vm208_vm15 = vcmp.eq.s32.totalorder %v206_v35, 0  ;;  %vm211_vm0 = vcmp.eq.s32.totalorder %v206_v35, 2  ;;  %vm207_vm1 = vcmp.lt.s32.totalorder %v206_v35, 2 }
  0xd2   :  { %v222_v2 = vadd.s32 4294967294, %v167_v1 }
  0xd4   :  { %vm223_vm12 = vcmp.lt.s32.totalorder %v222_v2, 0 }
  0xd5   :  { %v170_v3 = vsel %vm223_vm12, 0, %v222_v2 }
  0xd6   :  { %v171_v4 = vsub.s32 32, %v170_v3  ;;  %v175_v5 = vsub.s32 4294967266, %v170_v3  ;;  %v172_v6 = vshll.u32 %v163_v59, %v170_v3 }
  0xd8   :  { %v173_v7 = vshrl.u32 %v155_v41, %v171_v4  ;;  %v176_v8 = vadd.s32 127, %v175_v5 }
  0xda   :  { %v174_v63 = vor.u32 %v173_v7, %v172_v6  ;;  %v177_v9 = vshll.u32 %v176_v8, 23 }
  0xdc   :  { %v178_v10 = vor.u32 4788187, %v177_v9  ;;  %v181_v12 = vcvt.s32.f32 %v174_v63 }
  0xde   :  { %v179_v11 = vand.u32 2147483647, %v178_v10 }
  0xe0   :  { %v182_v13 = vmul.f32 %v181_v12, %v179_v11 }
  0xe2   :  { %v183_v14 = vxor.u32 2147483648, %v182_v13 }
  0xe4   :  { %v184_v15 = vsel %vm63_vm13, %v183_v14, %v182_v13 }
  0xe5   :  { %v187_v17 = vsel %vm62_vm14, %v297_v30, %v184_v15 }
  0xe6   :  { %v189_v18 = vmul.f32 %v187_v17, %v187_v17 }
  0xe8   :  { %v190_v19 = vmul.f32 -0.001358992, %v189_v18  ;;  %v197_v20 = vmul.f32 -0.00019511016, %v189_v18 }
  0xea   :  { %v191_v22 = vadd.f32 0.041655596, %v190_v19  ;;  %v198_v23 = vadd.f32 0.008332121, %v197_v20 }
  0xec   :  { %v192_v25 = vmul.f32 %v191_v22, %v189_v18  ;;  %v199_v26 = vmul.f32 %v198_v23, %v189_v18 }
  0xee   :  { %v193_v27 = vadd.f32 -0.4999988, %v192_v25  ;;  %v200_v28 = vadd.f32 -0.16666654, %v199_v26 }
  0xf0   :  { %v194_v31 = vmul.f32 %v193_v27, %v189_v18  ;;  %v201_v32 = vmul.f32 %v200_v28, %v189_v18 }
  0xf2   :  { %v195_v33 = vadd.f32 1.0, %v194_v31  ;;  %v202_v34 = vadd.f32 1.0, %v201_v32 }
  0xf4   :  { %v203_v36 = vmul.f32 %v202_v34, %v187_v17  ;;  %v212_v37 = vxor.u32 2147483648, %v195_v33 }
  0xf6   :  { %v209_v38 = vxor.u32 2147483648, %v203_v36  ;;  %v213_v43 = vsel %vm211_vm0, %v212_v37, %v203_v36 }
  0xf8   :  { %v210_v40 = vsel %vm208_vm15, %v195_v33, %v209_v38 }
  0xf9   :  { %v214_v44 = vsel %vm207_vm1, %v210_v40, %v213_v43 }
  0xfa   :  { %v215_v45 = vsel %vm204_vm2, nan, %v214_v44 }
  0xfb   :  { %216 = vst [vmem:[%s363_s3] sm:$0xff] %v215_v45 }

</bundles_post_ra>
